<compile_context>
chip_gen: v7x
topology: tpu7x:2x2x1
jax: 0.10.0
libtpu: 0.0.40
codegen_flags: <defaults>
</compile_context>

<pallas_src>
import functools

import jax
import jax.numpy as jnp
from jax.experimental import pallas as pl
from jax.experimental.pallas import tpu as pltpu


def _round_up(x: int, m: int) -> int:
    return (x + m - 1) // m * m


def hy_kernel(params_ref, x_ref, out_ref):
    """Fused affine (Linear(4,4) o Linear(4,2)) + 2-class softmax.

    params_ref : SMEM f32[10] = [W_eff[0,0..3], W_eff[1,0..3], b_eff[0], b_eff[1]]
    x_ref      : VMEM f32[4, TB]  (features on sublanes, batch on lanes)
    out_ref    : VMEM f32[2, TB]
    """
    x = x_ref[...]                                                   # [4, TB]

    # Unrolled VPU multiply-adds against SMEM weight scalars (MXU not used).
    y0 = (params_ref[0] * x[0:1, :] + params_ref[1] * x[1:2, :]
          + params_ref[2] * x[2:3, :] + params_ref[3] * x[3:4, :]
          + params_ref[8])                                           # [1, TB]
    y1 = (params_ref[4] * x[0:1, :] + params_ref[5] * x[1:2, :]
          + params_ref[6] * x[2:3, :] + params_ref[7] * x[3:4, :]
          + params_ref[9])                                           # [1, TB]

    # Numerically stable softmax over the 2 logits (feature axis = sublanes).
    m = jnp.maximum(y0, y1)
    e0 = jnp.exp(y0 - m)
    e1 = jnp.exp(y1 - m)
    # approx=True would move the divide fully onto the EUP, at ~1e-3 rel err;
    # exact reciprocal keeps bit-tight agreement with the reference softmax.
    inv = pl.reciprocal(e0 + e1, approx=False)
    out_ref[0:1, :] = e0 * inv
    out_ref[1:2, :] = e1 * inv


@functools.partial(jax.jit, static_argnames=("block_b",))
def hy_forward(x1, x2, w1, b1, w2, b2, block_b=1024):
    B = x1.shape[0]

    # --- trace-time algebra: fuse the two Linears (forward() skips the ReLU) ---
    w_eff = (w2 @ w1).astype(jnp.float32)                            # [2, 4]
    b_eff = (b1 @ w2.T + b2).astype(jnp.float32)                     # [1, 2]
    params = jnp.concatenate([w_eff.reshape(-1), b_eff.reshape(-1)]) # f32[10] -> SMEM

    # --- batch-on-lanes layout: concat + transpose done in the wrapper (XLA) ---
    xT = jnp.concatenate([x1, x2], axis=1).T.astype(jnp.float32)     # [4, B]

    tb = min(block_b, _round_up(B, 128))                             # lane tile over batch
    b_pad = _round_up(B, tb)
    if b_pad != B:
        xT = jnp.pad(xT, ((0, 0), (0, b_pad - B)))

    outT = pl.pallas_call(
        hy_kernel,
        out_shape=jax.ShapeDtypeStruct((2, b_pad), jnp.float32),
        grid=(b_pad // tb,),
        in_specs=[
            # tiny fused-weight table: resident in SMEM across all grid steps
            pl.BlockSpec(memory_space=pltpu.MemorySpace.SMEM),
            # batch tiles, auto double-buffered by the BlockSpec pipeline
            pl.BlockSpec((4, tb), lambda i: (0, i)),
        ],
        out_specs=pl.BlockSpec((2, tb), lambda i: (0, i)),
        compiler_params=pltpu.CompilerParams(
            dimension_semantics=("parallel",),   # v7x: shard batch tiles over both TCs
        ),
    )(params, xT)

    return outT[:, :B].T                                             # PyTorch-facing [B, 2]


def reference_forward(x1, x2, w1, b1, w2, b2):
    x = jnp.concatenate([x1, x2], axis=1)
    h = x @ w1.T + b1
    y = h @ w2.T + b2
    return jax.nn.softmax(y, axis=1)


if __name__ == "__main__":
    key = jax.random.PRNGKey(0)
    k1, k2, kw1, kb1, kw2, kb2 = jax.random.split(key, 6)

    B = 8
    # forward() implies cat((x1, x2), dim=1) has 4 features -> x1, x2 are [B, 2].
    x1 = jax.random.normal(k1, (B, 2), dtype=jnp.float32)
    x2 = jax.random.normal(k2, (B, 2), dtype=jnp.float32)

    # Deterministic parameter init mimicking nn.Linear (uniform +/- 1/sqrt(fan_in)).
    w1 = jax.random.uniform(kw1, (4, 4), jnp.float32, -0.5, 0.5)   # Linear(4,4).weight
    b1 = jax.random.uniform(kb1, (1, 4), jnp.float32, -0.5, 0.5)   # Linear(4,4).bias
    w2 = jax.random.uniform(kw2, (2, 4), jnp.float32, -0.5, 0.5)   # Linear(4,2).weight
    b2 = jax.random.uniform(kb2, (1, 2), jnp.float32, -0.5, 0.5)   # Linear(4,2).bias

    out = hy_forward(x1, x2, w1, b1, w2, b2)
    out = jax.block_until_ready(out)

    ref = reference_forward(x1, x2, w1, b1, w2, b2)
    assert out.shape == (B, 2)
    assert jnp.allclose(out, ref, atol=1e-5, rtol=1e-5), "mismatch vs reference"
    assert jnp.allclose(jnp.sum(out, axis=1), 1.0, atol=1e-5), "softmax rows must sum to 1"

    print("KERNEL_OK")
</pallas_src>

<mosaic_0001>
module attributes {stable_mosaic.version = 11 : i64} {
  func.func @hy_kernel(%arg0: i32, %arg1: memref<10xf32, #tpu.memory_space<smem>>, %arg2: memref<4x128xf32, #tpu.memory_space<vmem>>, %arg3: memref<2x128xf32, #tpu.memory_space<vmem>>) attributes {dimension_semantics = [#tpu.dimension_semantics<parallel>], iteration_bounds = array<i64: 1>, scalar_prefetch = 0 : i64, scratch_operands = 0 : i64, tpu.core_type = #tpu.core_type<tc>, window_params = [{transform_indices = @transform_0, window_bounds = array<i64: 10>}, {transform_indices = @transform_1, window_bounds = array<i64: 4, 128>}, {transform_indices = @transform_2, window_bounds = array<i64: 2, 128>}]} {
    %c0 = arith.constant 0 : index
    %c0_0 = arith.constant 0 : index
    %0 = vector.load %arg2[%c0, %c0_0] : memref<4x128xf32, #tpu.memory_space<vmem>>, vector<4x128xf32>
    %c0_1 = arith.constant 0 : index
    %1 = memref.load %arg1[%c0_1] : memref<10xf32, #tpu.memory_space<smem>>
    %2 = vector.extract_strided_slice %0 {offsets = [0, 0], sizes = [1, 128], strides = [1, 1]} : vector<4x128xf32> to vector<1x128xf32>
    %3 = vector.broadcast %1 : f32 to vector<1x128xf32>
    %4 = arith.mulf %3, %2 : vector<1x128xf32>
    %c1 = arith.constant 1 : index
    %5 = memref.load %arg1[%c1] : memref<10xf32, #tpu.memory_space<smem>>
    %6 = vector.extract_strided_slice %0 {offsets = [1, 0], sizes = [1, 128], strides = [1, 1]} : vector<4x128xf32> to vector<1x128xf32>
    %7 = vector.broadcast %5 : f32 to vector<1x128xf32>
    %8 = arith.mulf %7, %6 : vector<1x128xf32>
    %9 = arith.addf %4, %8 : vector<1x128xf32>
    %c2 = arith.constant 2 : index
    %10 = memref.load %arg1[%c2] : memref<10xf32, #tpu.memory_space<smem>>
    %11 = vector.extract_strided_slice %0 {offsets = [2, 0], sizes = [1, 128], strides = [1, 1]} : vector<4x128xf32> to vector<1x128xf32>
    %12 = vector.broadcast %10 : f32 to vector<1x128xf32>
    %13 = arith.mulf %12, %11 : vector<1x128xf32>
    %14 = arith.addf %9, %13 : vector<1x128xf32>
    %c3 = arith.constant 3 : index
    %15 = memref.load %arg1[%c3] : memref<10xf32, #tpu.memory_space<smem>>
    %16 = vector.extract_strided_slice %0 {offsets = [3, 0], sizes = [1, 128], strides = [1, 1]} : vector<4x128xf32> to vector<1x128xf32>
    %17 = vector.broadcast %15 : f32 to vector<1x128xf32>
    %18 = arith.mulf %17, %16 : vector<1x128xf32>
    %19 = arith.addf %14, %18 : vector<1x128xf32>
    %c8 = arith.constant 8 : index
    %20 = memref.load %arg1[%c8] : memref<10xf32, #tpu.memory_space<smem>>
    %21 = vector.broadcast %20 : f32 to vector<1x128xf32>
    %22 = arith.addf %19, %21 : vector<1x128xf32>
    %c4 = arith.constant 4 : index
    %23 = memref.load %arg1[%c4] : memref<10xf32, #tpu.memory_space<smem>>
    %24 = vector.extract_strided_slice %0 {offsets = [0, 0], sizes = [1, 128], strides = [1, 1]} : vector<4x128xf32> to vector<1x128xf32>
    %25 = vector.broadcast %23 : f32 to vector<1x128xf32>
    %26 = arith.mulf %25, %24 : vector<1x128xf32>
    %c5 = arith.constant 5 : index
    %27 = memref.load %arg1[%c5] : memref<10xf32, #tpu.memory_space<smem>>
    %28 = vector.extract_strided_slice %0 {offsets = [1, 0], sizes = [1, 128], strides = [1, 1]} : vector<4x128xf32> to vector<1x128xf32>
    %29 = vector.broadcast %27 : f32 to vector<1x128xf32>
    %30 = arith.mulf %29, %28 : vector<1x128xf32>
    %31 = arith.addf %26, %30 : vector<1x128xf32>
    %c6 = arith.constant 6 : index
    %32 = memref.load %arg1[%c6] : memref<10xf32, #tpu.memory_space<smem>>
    %33 = vector.extract_strided_slice %0 {offsets = [2, 0], sizes = [1, 128], strides = [1, 1]} : vector<4x128xf32> to vector<1x128xf32>
    %34 = vector.broadcast %32 : f32 to vector<1x128xf32>
    %35 = arith.mulf %34, %33 : vector<1x128xf32>
    %36 = arith.addf %31, %35 : vector<1x128xf32>
    %c7 = arith.constant 7 : index
    %37 = memref.load %arg1[%c7] : memref<10xf32, #tpu.memory_space<smem>>
    %38 = vector.extract_strided_slice %0 {offsets = [3, 0], sizes = [1, 128], strides = [1, 1]} : vector<4x128xf32> to vector<1x128xf32>
    %39 = vector.broadcast %37 : f32 to vector<1x128xf32>
    %40 = arith.mulf %39, %38 : vector<1x128xf32>
    %41 = arith.addf %36, %40 : vector<1x128xf32>
    %c9 = arith.constant 9 : index
    %42 = memref.load %arg1[%c9] : memref<10xf32, #tpu.memory_space<smem>>
    %43 = vector.broadcast %42 : f32 to vector<1x128xf32>
    %44 = arith.addf %41, %43 : vector<1x128xf32>
    %45 = arith.maximumf %22, %44 : vector<1x128xf32>
    %46 = arith.subf %22, %45 : vector<1x128xf32>
    %47 = math.exp %46 : vector<1x128xf32>
    %48 = arith.subf %44, %45 : vector<1x128xf32>
    %49 = math.exp %48 : vector<1x128xf32>
    %50 = arith.addf %47, %49 : vector<1x128xf32>
    %51 = tpu.reciprocal %50 : vector<1x128xf32> -> vector<1x128xf32>
    %52 = arith.mulf %47, %51 : vector<1x128xf32>
    %c0_2 = arith.constant 0 : index
    %c0_3 = arith.constant 0 : index
    %53 = vector.load %arg3[%c0_2, %c0_3] : memref<2x128xf32, #tpu.memory_space<vmem>>, vector<1x128xf32>
    tpu.vector_store %arg3[%c0_2, %c0_3], %52 {strides = array<i32>} : memref<2x128xf32, #tpu.memory_space<vmem>>, vector<1x128xf32>,
    %54 = arith.mulf %49, %51 : vector<1x128xf32>
    %c1_4 = arith.constant 1 : index
    %c0_5 = arith.constant 0 : index
    %55 = vector.load %arg3[%c1_4, %c0_5] : memref<2x128xf32, #tpu.memory_space<vmem>>, vector<1x128xf32>
    tpu.vector_store %arg3[%c1_4, %c0_5], %54 {strides = array<i32>} : memref<2x128xf32, #tpu.memory_space<vmem>>, vector<1x128xf32>,
    return
  }
  func.func @transform_0(%arg0: i32) -> i32 {
    %c0_i32 = arith.constant 0 : i32
    %c0_i32_0 = arith.constant 0 : i32
    return %c0_i32 : i32
  }
  func.func @transform_1(%arg0: i32) -> (i32, i32) {
    %c0_i32 = arith.constant 0 : i32
    %c0_i32_0 = arith.constant 0 : i32
    return %c0_i32, %arg0 : i32, i32
  }
  func.func @transform_2(%arg0: i32) -> (i32, i32) {
    %c0_i32 = arith.constant 0 : i32
    %c0_i32_0 = arith.constant 0 : i32
    return %c0_i32, %arg0 : i32, i32
  }
}

</mosaic_0001>

<bundles_post_ra>
// kernel: hy_forward.1
= control target key start
LH: loop header
LB: loop body
LE: loop exit
PB: predicated region body
PF: predicated region fallthrough
CT: control target
= control target key end

     0   :  { %7 = vsyncpa [#allocation3], 0  ;;  %s155_s0 = inlined_call_operand.vmem [shape: f32[10], index: 0, kind: input, shape index: {}]   ;;  %s156_s1 = inlined_call_operand.vmem [shape: f32[4,128], index: 1, kind: input, shape index: {}]   ;;  %s157_s2 = inlined_call_operand.vmem [shape: f32[2,128], index: 2, kind: output, shape index: {}]  }
   0x1   :  { %s14_s11 = sshll.u32 %s155_s0, 4  ;;  %s15_s11 = int_to_ptr.vmem [resolvable:$true] %s14_s11 }
   0x2   :  { %s113_s12 = scalar_lea.vmem %s15_s11, 16  ;;  %p118_p1 = scmp.lt.s32.totalorder %s15_s11, %s15_s11 }
   0x3   :  { %p114_p0 = scmp.ne.s32.totalorder %s15_s11, %s113_s12  ;;  %p119_p2 = scmp.lt.s32.totalorder %s113_s12, %s113_s12 }
   0x5   :  { %p120_p3 = por %p119_p2, %p118_p1 }
   0x7   :  { %p121_p4 = pnand %p120_p3, %p114_p0 }
   0x9   :  { %124 = shalt.err (!%p121_p4)
}
   0xa   :  { %s127_s13 = smov [#allocation2]  }
   0xb   :  { %17 = dma.vmem_to_smem %s15_s11, 16, %s127_s13, [#allocation3]  }
   0xc   :  { %125 = dma.done.wait [#allocation3], 16  }
   0xd   :  { %126 = vsyncadd [#allocation3], 4294967280 }
   0xe   :  { %23 = sfence }
   0xf   :  { %s25_s14 = sld [smem:[#allocation2]]  ;;  %s97_s15 = sld [smem:[#allocation2 + $0x1]]  ;;  %v24_v0 = vld [vmem:[%s156_s1] sm:$0xf] }
  0x10   :  { %s98_s16 = sld [smem:[#allocation2 + $0x2]]  ;;  %s99_s17 = sld [smem:[#allocation2 + $0x3]] }
  0x11   :  { %s101_s18 = sld [smem:[#allocation2 + $0x4]]  ;;  %s102_s19 = sld [smem:[#allocation2 + $0x5]] }
  0x12   :  { %s103_s0 = sld [smem:[#allocation2 + $0x6]]  ;;  %s104_s22 = sld [smem:[#allocation2 + $0x7]] }
  0x13   :  { %s100_s23 = sld [smem:[#allocation2 + $0x8]]  ;;  %s105_s24 = sld [smem:[#allocation2 + $0x9]] }
  0x15   :  { %v26_v1 = vstv %s25_s14  ;;  %v29_v2 = vstv %s97_s15 }
  0x16   :  { %v27_v3 = vmul.f32 %v26_v1, %v24_v0  ;;  %v30_v4 = vmul.f32 %v29_v2, %v24_v0  ;;  %v36_v5 = vstv %s98_s16  ;;  %v43_v6 = vstv %s99_s17 }
  0x17   :  { %v37_v7 = vmul.f32 %v36_v5, %v24_v0  ;;  %v44_v8 = vmul.f32 %v43_v6, %v24_v0  ;;  %v53_v9 = vstv %s101_s18  ;;  %v56_v11 = vstv %s102_s19 }
  0x18   :  { %v32_v10 = vrot.slane %v30_v4, 1  ;;  %v63_v12 = vstv %s103_s0  ;;  %v54_v14 = vmul.f32 %v53_v9, %v24_v0  ;;  %v57_v15 = vmul.f32 %v56_v11, %v24_v0 }
  0x19   :  { %v39_v13 = vrot.slane %v37_v7, 2  ;;  %v64_v16 = vmul.f32 %v63_v12, %v24_v0  ;;  %v46_v18 = vrot.slane %v44_v8, 3  ;;  %v70_v19 = vstv %s104_s22 }
  0x1a   :  { %v34_v17 = vadd.f32 %v32_v10, %v27_v3  ;;  %v59_v20 = vrot.slane %v57_v15, 1  ;;  %v71_v22 = vmul.f32 %v70_v19, %v24_v0  ;;  %v50_v27 = vstv %s100_s23 }
  0x1b   :  { %v66_v21 = vrot.slane %v64_v16, 2  ;;  %v77_v29 = vstv %s105_s24 }
  0x1c   :  { %v41_v23 = vadd.f32 %v39_v13, %v34_v17  ;;  %v61_v24 = vadd.f32 %v59_v20, %v54_v14  ;;  %v73_v25 = vrot.slane %v71_v22, 3 }
  0x1e   :  { %v48_v26 = vadd.f32 %v46_v18, %v41_v23  ;;  %v68_v28 = vadd.f32 %v66_v21, %v61_v24 }
  0x20   :  { %v51_v30 = vadd.f32 %v50_v27, %v48_v26  ;;  %v75_v31 = vadd.f32 %v73_v25, %v68_v28 }
  0x22   :  { %v78_v32 = vadd.f32 %v77_v29, %v75_v31 }
  0x24   :  { %v79_v33 = vmax.f32 %v51_v30, %v78_v32 }
  0x26   :  { %v80_v34 = vsub.f32 %v51_v30, %v79_v33  ;;  %v83_v35 = vsub.f32 %v78_v32, %v79_v33 }
  0x28   :  { %v81_v36 = vmul.f32 1.442695, %v80_v34  ;;  %v84_v37 = vmul.f32 1.442695, %v83_v35 }
  0x2a   :  { %107 = vpow2.f32 %v81_v36 }
  0x2b   :  { %109 = vpow2.f32 %v84_v37 }
  0x34   :  { %v108_v38 = vpop.eup %107 }
  0x35   :  { %v110_v39 = vpop.eup %109 }
  0x36   :  { %v86_v40 = vadd.f32 %v110_v39, %v108_v38 }
  0x38   :  { %111 = vrcp.f32 %v86_v40 }
  0x42   :  { %v112_v41 = vpop.eup %111 }
  0x43   :  { %v88_v42 = vmul.f32 %v112_v41, %v108_v38  ;;  %v90_v43 = vmul.f32 %v112_v41, %v110_v39 }
  0x45   :  { %89 = vst [vmem:[%s157_s2] sm:$0x1] %v88_v42  ;;  %91 = vst [vmem:[%s157_s2 + $0x1] sm:$0x1] %v90_v43 }
  0x46   :  { %96 = vsyncpa [#allocation3], 1 }

</bundles_post_ra>
